<compile_context>
chip_gen: v7x
topology: tpu7x:2x2x1
jax: 0.10.0
libtpu: 0.0.40
codegen_flags: <defaults>
</compile_context>

<pallas_src>
import math
import functools
import numpy as np
import jax
import jax.numpy as jnp
from jax import lax
from jax.experimental import pallas as pl
from jax.experimental.pallas import tpu as pltpu


K_MAX = 4  # largest branch kernel size (conv4)


def _convblock_kernel(x_ref, w_ref, b_ref, o_ref, *, H, W, B_blk,
                      compute_dtype):
    # x_ref : (B_blk, Cin_p, Lflat)  flat spatial = 1 zero + (H+3)*W (H padded
    #                                1 before / 2 after) + 3 zeros
    # w_ref : (Cout, 16*Cin_p)       fused 4x4 weights, tap-major/channel-minor
    # b_ref : (Cout, 1)
    # o_ref : (B_blk, Cout, H*W)     lane-dense output
    Lo = H * W

    wmat = w_ref[...]
    bias = b_ref[...].astype(jnp.float32)
    if compute_dtype is not None:
        wmat = wmat.astype(compute_dtype)

    # Per-dj lane masks for the width boundary: in the flat layout a dj shift
    # wraps into the neighbouring row, so contributions with w + dj - 1
    # outside [0, W) must be zeroed.  (Hoisted out of the batch loop.)
    w_idx = lax.broadcasted_iota(jnp.int32, (1, Lo), 1) % W
    masks = []
    for dj in range(K_MAX):
        if dj == 1:                       # w + 0 is always in range
            masks.append(None)
        else:
            col = w_idx + (dj - 1)
            masks.append(jnp.logical_and(col >= 0, col < W))

    for b in range(B_blk):                # B_blk is kept small (static unroll)
        xflat = x_ref[b]                  # (Cin_p, Lflat)
        if compute_dtype is not None:
            xflat = xflat.astype(compute_dtype)

        parts = []
        for di in range(K_MAX):
            for dj in range(K_MAX):
                start = di * W + dj                      # static lane offset
                shifted = xflat[:, start:start + Lo]     # (Cin_p, H*W)
                if masks[dj] is not None:
                    shifted = jnp.where(masks[dj], shifted, 0)
                parts.append(shifted)
        rhs = jnp.concatenate(parts, axis=0)             # (16*Cin_p, H*W)

        acc = lax.dot_general(wmat, rhs, (((1,), (0,)), ((), ())),
                              preferred_element_type=jnp.float32)
        acc = acc + bias                                 # (Cout, H*W)
        o_ref[b, :, :] = acc.astype(o_ref.dtype)


def conv_block_forward(x_nchw, params, *, block_batch=None, compute_dtype=None):
    """ConvBlock forward.  x_nchw: (N, Cin, H, W) -> (N, 4*d, H, W).

    params = (w1,b1,w2,b2,w3,b3,w4,b4); wk: (k,k,Cin,d) HWIO, bk: (d,).
    compute_dtype=jnp.bfloat16 enables bf16 MXU inputs (v6e/v7x); default f32.
    """
    N, Cin, H, W = x_nchw.shape
    w1, b1, w2, b2, w3, b3, w4, b4 = params
    d = w1.shape[-1]
    Cout = 4 * d

    Cin_p = ((Cin + 7) // 8) * 8          # sublane-align channels
    Hp = H + (K_MAX - 1)                  # H padded 1 before, 2 after
    Lo = H * W
    Lflat = Hp * W + K_MAX                # 1 leading + 3 trailing flat zeros

    # Zero-pad channels (to Cin_p) and height in one shot, flatten spatial
    # (free for NCHW), then pad the flat axis so every tap's lane window
    # [di*W + dj, di*W + dj + H*W) stays in bounds.
    xh = jnp.pad(x_nchw, ((0, 0), (0, Cin_p - Cin), (1, 2), (0, 0)))
    xf = xh.reshape(N, Cin_p, Hp * W)
    xpf = jnp.pad(xf, ((0, 0), (0, 0), (1, K_MAX - 1)))   # (N, Cin_p, Lflat)

    # Fused 4x4xCin_pxCout kernel.  Branch k ('same' left pad = (k-1)//2) is
    # placed at offset 1 - (k-1)//2 inside the 4x4 window on both dims.
    Wf = jnp.zeros((K_MAX, K_MAX, Cin_p, Cout), w1.dtype)
    for idx, (wk, k) in enumerate(((w1, 1), (w2, 2), (w3, 3), (w4, 4))):
        off = 1 - (k - 1) // 2
        Wf = Wf.at[off:off + k, off:off + k, :Cin, idx * d:(idx + 1) * d].set(wk)
    # (Cout, 16*Cin_p), rows ordered tap-major / channel-minor to match the
    # in-kernel im2col stacking order.
    w_mat = jnp.transpose(Wf.reshape(K_MAX * K_MAX * Cin_p, Cout))
    bias = jnp.concatenate([b1, b2, b3, b4]).reshape(Cout, 1)

    # Batch blocking: target ~0.5 MiB blocks, but keep >= 2 grid steps when
    # the batch allows it (v7x has two TensorCores sharing the grid).
    if block_batch is None:
        per_img = (Cin_p * Lflat + Cout * Lo) * x_nchw.dtype.itemsize
        target = max(1, (512 * 1024) // max(per_img, 1))
        block_batch = 1
        for cand in range(min(N, target), 0, -1):
            if N % cand != 0:
                continue
            if N >= 2 and N // cand < 2:
                continue
            block_batch = cand
            break
    assert N % block_batch == 0
    grid = (N // block_batch,)

    kernel = functools.partial(_convblock_kernel, H=H, W=W,
                               B_blk=block_batch, compute_dtype=compute_dtype)

    out_flat = pl.pallas_call(
        kernel,
        out_shape=jax.ShapeDtypeStruct((N, Cout, Lo), x_nchw.dtype),
        grid_spec=pltpu.PrefetchScalarGridSpec(
            num_scalar_prefetch=0,
            grid=grid,
            in_specs=[
                pl.BlockSpec((block_batch, Cin_p, Lflat),
                             lambda n: (n, 0, 0)),
                pl.BlockSpec((Cout, K_MAX * K_MAX * Cin_p),
                             lambda n: (0, 0)),
                pl.BlockSpec((Cout, 1), lambda n: (0, 0)),
            ],
            out_specs=pl.BlockSpec((block_batch, Cout, Lo),
                                   lambda n: (n, 0, 0)),
        ),
        compiler_params=pltpu.CompilerParams(
            dimension_semantics=("parallel",),
            vmem_limit_bytes=32 * 1024 * 1024),
    )(xpf, w_mat, bias)

    # Free metadata reshape back to NCHW.
    return out_flat.reshape(N, Cout, H, W)


def init_params(key, input_dim, output_dim):
    """Deterministic init mirroring nn.Conv2d defaults (U(+/- 1/sqrt(fan_in)))."""
    d = output_dim // 4
    params = []
    for k in (1, 2, 3, 4):
        key, kw, kb = jax.random.split(key, 3)
        fan_in = input_dim * k * k
        bound = 1.0 / math.sqrt(fan_in)
        w = jax.random.uniform(kw, (k, k, input_dim, d), jnp.float32,
                               minval=-bound, maxval=bound)      # HWIO
        b = jax.random.uniform(kb, (d,), jnp.float32,
                               minval=-bound, maxval=bound)
        params += [w, b]
    return tuple(params)


def reference_forward(x_nchw, params):
    """Pure-JAX reference (lax.conv) with PyTorch 'same' asymmetric padding."""
    x = jnp.transpose(x_nchw, (0, 2, 3, 1))                      # NHWC
    w1, b1, w2, b2, w3, b3, w4, b4 = params
    outs = []
    for w, b, k in ((w1, b1, 1), (w2, b2, 2), (w3, b3, 3), (w4, b4, 4)):
        pb = (k - 1) // 2
        pa = (k - 1) - pb
        y = lax.conv_general_dilated(
            x, w, window_strides=(1, 1),
            padding=[(pb, pa), (pb, pa)],
            dimension_numbers=('NHWC', 'HWIO', 'NHWC'))
        outs.append(y + b)
    out = jnp.concatenate(outs, axis=-1)
    return jnp.transpose(out, (0, 3, 1, 2))                      # back to NCHW


if __name__ == "__main__":
    key = jax.random.PRNGKey(0)
    key, kx = jax.random.split(key)

    batch, input_dim, Hs, Ws = 2, 4, 16, 16
    output_dim = 32                                              # d = 8 / branch

    x = jax.random.normal(kx, (batch, input_dim, Hs, Ws), jnp.float32)  # NCHW
    params = init_params(key, input_dim, output_dim)

    out = jax.block_until_ready(jax.jit(conv_block_forward)(x, params))
    ref = jax.block_until_ready(reference_forward(x, params))

    assert out.shape == (batch, output_dim, Hs, Ws), out.shape
    np.testing.assert_allclose(np.asarray(out), np.asarray(ref),
                               rtol=1e-5, atol=1e-5)

    print("KERNEL_OK")
</pallas_src>

<mosaic_0001>
module attributes {stable_mosaic.version = 11 : i64} {
  func.func @_convblock_kernel(%arg0: i32, %arg1: memref<1x8x308xf32, #tpu.memory_space<vmem>>, %arg2: memref<32x128xf32, #tpu.memory_space<vmem>>, %arg3: memref<32x1xf32, #tpu.memory_space<vmem>>, %arg4: memref<1x32x256xf32, #tpu.memory_space<vmem>>) attributes {dimension_semantics = [#tpu.dimension_semantics<parallel>], iteration_bounds = array<i64: 2>, scalar_prefetch = 0 : i64, scratch_operands = 0 : i64, tpu.core_type = #tpu.core_type<tc>, window_params = [{transform_indices = @transform_0, window_bounds = array<i64: 1, 8, 308>}, {pipeline_mode = #tpu.pipeline_mode<synchronous>, transform_indices = @transform_1, window_bounds = array<i64: 32, 128>}, {pipeline_mode = #tpu.pipeline_mode<synchronous>, transform_indices = @transform_2, window_bounds = array<i64: 32, 1>}, {transform_indices = @transform_3, window_bounds = array<i64: 1, 32, 256>}]} {
    %c0 = arith.constant 0 : index
    %c0_0 = arith.constant 0 : index
    %0 = vector.load %arg2[%c0, %c0_0] : memref<32x128xf32, #tpu.memory_space<vmem>>, vector<32x128xf32>
    %c0_1 = arith.constant 0 : index
    %c0_2 = arith.constant 0 : index
    %1 = vector.load %arg3[%c0_1, %c0_2] : memref<32x1xf32, #tpu.memory_space<vmem>>, vector<32x1xf32>
    %2 = tpu.iota {dimensions = array<i32: 1>} : vector<1x256xi32>
    %c16_i32 = arith.constant 16 : i32
    %c0_i32 = arith.constant 0 : i32
    %3 = arith.cmpi eq, %c16_i32, %c0_i32 : i32
    %c1_i32 = arith.constant 1 : i32
    %4 = arith.select %3, %c1_i32, %c16_i32 : i32
    %5 = vector.broadcast %4 : i32 to vector<1x256xi32>
    %6 = arith.remsi %2, %5 : vector<1x256xi32>
    %c0_i32_3 = arith.constant 0 : i32
    %7 = vector.broadcast %c0_i32_3 : i32 to vector<1x256xi32>
    %8 = arith.cmpi ne, %6, %7 : vector<1x256xi32>
    %c0_i32_4 = arith.constant 0 : i32
    %9 = vector.broadcast %c0_i32_4 : i32 to vector<1x256xi32>
    %10 = arith.cmpi slt, %6, %9 : vector<1x256xi32>
    %c0_i32_5 = arith.constant 0 : i32
    %11 = arith.cmpi slt, %4, %c0_i32_5 : i32
    %12 = vector.broadcast %11 : i1 to vector<1x256xi1>
    %13 = vector.broadcast %12 : vector<1x256xi1> to vector<1x256xi1>
    %14 = arith.xori %10, %13 : vector<1x256xi1>
    %15 = arith.andi %14, %8 : vector<1x256xi1>
    %16 = vector.broadcast %4 : i32 to vector<1x256xi32>
    %17 = arith.addi %6, %16 : vector<1x256xi32>
    %18 = arith.select %15, %17, %6 : vector<1x256xi1>, vector<1x256xi32>
    %c-1_i32 = arith.constant -1 : i32
    %19 = vector.broadcast %c-1_i32 : i32 to vector<1x256xi32>
    %20 = arith.addi %18, %19 : vector<1x256xi32>
    %c0_i32_6 = arith.constant 0 : i32
    %21 = vector.broadcast %c0_i32_6 : i32 to vector<1x256xi32>
    %22 = arith.cmpi sge, %20, %21 : vector<1x256xi32>
    %c16_i32_7 = arith.constant 16 : i32
    %23 = vector.broadcast %c16_i32_7 : i32 to vector<1x256xi32>
    %24 = arith.cmpi slt, %20, %23 : vector<1x256xi32>
    %25 = arith.andi %22, %24 : vector<1x256xi1>
    %c1_i32_8 = arith.constant 1 : i32
    %26 = vector.broadcast %c1_i32_8 : i32 to vector<1x256xi32>
    %27 = arith.addi %18, %26 : vector<1x256xi32>
    %c0_i32_9 = arith.constant 0 : i32
    %28 = vector.broadcast %c0_i32_9 : i32 to vector<1x256xi32>
    %29 = arith.cmpi sge, %27, %28 : vector<1x256xi32>
    %c16_i32_10 = arith.constant 16 : i32
    %30 = vector.broadcast %c16_i32_10 : i32 to vector<1x256xi32>
    %31 = arith.cmpi slt, %27, %30 : vector<1x256xi32>
    %32 = arith.andi %29, %31 : vector<1x256xi1>
    %c2_i32 = arith.constant 2 : i32
    %33 = vector.broadcast %c2_i32 : i32 to vector<1x256xi32>
    %34 = arith.addi %18, %33 : vector<1x256xi32>
    %c0_i32_11 = arith.constant 0 : i32
    %35 = vector.broadcast %c0_i32_11 : i32 to vector<1x256xi32>
    %36 = arith.cmpi sge, %34, %35 : vector<1x256xi32>
    %c16_i32_12 = arith.constant 16 : i32
    %37 = vector.broadcast %c16_i32_12 : i32 to vector<1x256xi32>
    %38 = arith.cmpi slt, %34, %37 : vector<1x256xi32>
    %39 = arith.andi %36, %38 : vector<1x256xi1>
    %c0_13 = arith.constant 0 : index
    %c0_14 = arith.constant 0 : index
    %c0_15 = arith.constant 0 : index
    %40 = vector.load %arg1[%c0_13, %c0_14, %c0_15] : memref<1x8x308xf32, #tpu.memory_space<vmem>>, vector<1x8x308xf32>
    %41 = vector.shape_cast %40 : vector<1x8x308xf32> to vector<8x308xf32>
    %42 = vector.extract_strided_slice %41 {offsets = [0, 0], sizes = [8, 256], strides = [1, 1]} : vector<8x308xf32> to vector<8x256xf32>
    %c0_i32_16 = arith.constant 0 : i32
    %43 = arith.sitofp %c0_i32_16 : i32 to f32
    %44 = vector.shape_cast %25 : vector<1x256xi1> to vector<1x256xi1>
    %45 = vector.broadcast %44 : vector<1x256xi1> to vector<8x256xi1>
    %46 = vector.broadcast %43 : f32 to vector<8x256xf32>
    %47 = arith.select %45, %42, %46 : vector<8x256xi1>, vector<8x256xf32>
    %48 = vector.extract_strided_slice %41 {offsets = [0, 1], sizes = [8, 256], strides = [1, 1]} : vector<8x308xf32> to vector<8x256xf32>
    %49 = vector.extract_strided_slice %41 {offsets = [0, 2], sizes = [8, 256], strides = [1, 1]} : vector<8x308xf32> to vector<8x256xf32>
    %c0_i32_17 = arith.constant 0 : i32
    %50 = arith.sitofp %c0_i32_17 : i32 to f32
    %51 = vector.shape_cast %32 : vector<1x256xi1> to vector<1x256xi1>
    %52 = vector.broadcast %51 : vector<1x256xi1> to vector<8x256xi1>
    %53 = vector.broadcast %50 : f32 to vector<8x256xf32>
    %54 = arith.select %52, %49, %53 : vector<8x256xi1>, vector<8x256xf32>
    %55 = vector.extract_strided_slice %41 {offsets = [0, 3], sizes = [8, 256], strides = [1, 1]} : vector<8x308xf32> to vector<8x256xf32>
    %c0_i32_18 = arith.constant 0 : i32
    %56 = arith.sitofp %c0_i32_18 : i32 to f32
    %57 = vector.shape_cast %39 : vector<1x256xi1> to vector<1x256xi1>
    %58 = vector.broadcast %57 : vector<1x256xi1> to vector<8x256xi1>
    %59 = vector.broadcast %56 : f32 to vector<8x256xf32>
    %60 = arith.select %58, %55, %59 : vector<8x256xi1>, vector<8x256xf32>
    %61 = vector.extract_strided_slice %41 {offsets = [0, 16], sizes = [8, 256], strides = [1, 1]} : vector<8x308xf32> to vector<8x256xf32>
    %c0_i32_19 = arith.constant 0 : i32
    %62 = arith.sitofp %c0_i32_19 : i32 to f32
    %63 = vector.shape_cast %25 : vector<1x256xi1> to vector<1x256xi1>
    %64 = vector.broadcast %63 : vector<1x256xi1> to vector<8x256xi1>
    %65 = vector.broadcast %62 : f32 to vector<8x256xf32>
    %66 = arith.select %64, %61, %65 : vector<8x256xi1>, vector<8x256xf32>
    %67 = vector.extract_strided_slice %41 {offsets = [0, 17], sizes = [8, 256], strides = [1, 1]} : vector<8x308xf32> to vector<8x256xf32>
    %68 = vector.extract_strided_slice %41 {offsets = [0, 18], sizes = [8, 256], strides = [1, 1]} : vector<8x308xf32> to vector<8x256xf32>
    %c0_i32_20 = arith.constant 0 : i32
    %69 = arith.sitofp %c0_i32_20 : i32 to f32
    %70 = vector.shape_cast %32 : vector<1x256xi1> to vector<1x256xi1>
    %71 = vector.broadcast %70 : vector<1x256xi1> to vector<8x256xi1>
    %72 = vector.broadcast %69 : f32 to vector<8x256xf32>
    %73 = arith.select %71, %68, %72 : vector<8x256xi1>, vector<8x256xf32>
    %74 = vector.extract_strided_slice %41 {offsets = [0, 19], sizes = [8, 256], strides = [1, 1]} : vector<8x308xf32> to vector<8x256xf32>
    %c0_i32_21 = arith.constant 0 : i32
    %75 = arith.sitofp %c0_i32_21 : i32 to f32
    %76 = vector.shape_cast %39 : vector<1x256xi1> to vector<1x256xi1>
    %77 = vector.broadcast %76 : vector<1x256xi1> to vector<8x256xi1>
    %78 = vector.broadcast %75 : f32 to vector<8x256xf32>
    %79 = arith.select %77, %74, %78 : vector<8x256xi1>, vector<8x256xf32>
    %80 = vector.extract_strided_slice %41 {offsets = [0, 32], sizes = [8, 256], strides = [1, 1]} : vector<8x308xf32> to vector<8x256xf32>
    %c0_i32_22 = arith.constant 0 : i32
    %81 = arith.sitofp %c0_i32_22 : i32 to f32
    %82 = vector.shape_cast %25 : vector<1x256xi1> to vector<1x256xi1>
    %83 = vector.broadcast %82 : vector<1x256xi1> to vector<8x256xi1>
    %84 = vector.broadcast %81 : f32 to vector<8x256xf32>
    %85 = arith.select %83, %80, %84 : vector<8x256xi1>, vector<8x256xf32>
    %86 = vector.extract_strided_slice %41 {offsets = [0, 33], sizes = [8, 256], strides = [1, 1]} : vector<8x308xf32> to vector<8x256xf32>
    %87 = vector.extract_strided_slice %41 {offsets = [0, 34], sizes = [8, 256], strides = [1, 1]} : vector<8x308xf32> to vector<8x256xf32>
    %c0_i32_23 = arith.constant 0 : i32
    %88 = arith.sitofp %c0_i32_23 : i32 to f32
    %89 = vector.shape_cast %32 : vector<1x256xi1> to vector<1x256xi1>
    %90 = vector.broadcast %89 : vector<1x256xi1> to vector<8x256xi1>
    %91 = vector.broadcast %88 : f32 to vector<8x256xf32>
    %92 = arith.select %90, %87, %91 : vector<8x256xi1>, vector<8x256xf32>
    %93 = vector.extract_strided_slice %41 {offsets = [0, 35], sizes = [8, 256], strides = [1, 1]} : vector<8x308xf32> to vector<8x256xf32>
    %c0_i32_24 = arith.constant 0 : i32
    %94 = arith.sitofp %c0_i32_24 : i32 to f32
    %95 = vector.shape_cast %39 : vector<1x256xi1> to vector<1x256xi1>
    %96 = vector.broadcast %95 : vector<1x256xi1> to vector<8x256xi1>
    %97 = vector.broadcast %94 : f32 to vector<8x256xf32>
    %98 = arith.select %96, %93, %97 : vector<8x256xi1>, vector<8x256xf32>
    %99 = vector.extract_strided_slice %41 {offsets = [0, 48], sizes = [8, 256], strides = [1, 1]} : vector<8x308xf32> to vector<8x256xf32>
    %c0_i32_25 = arith.constant 0 : i32
    %100 = arith.sitofp %c0_i32_25 : i32 to f32
    %101 = vector.shape_cast %25 : vector<1x256xi1> to vector<1x256xi1>
    %102 = vector.broadcast %101 : vector<1x256xi1> to vector<8x256xi1>
    %103 = vector.broadcast %100 : f32 to vector<8x256xf32>
    %104 = arith.select %102, %99, %103 : vector<8x256xi1>, vector<8x256xf32>
    %105 = vector.extract_strided_slice %41 {offsets = [0, 49], sizes = [8, 256], strides = [1, 1]} : vector<8x308xf32> to vector<8x256xf32>
    %106 = vector.extract_strided_slice %41 {offsets = [0, 50], sizes = [8, 256], strides = [1, 1]} : vector<8x308xf32> to vector<8x256xf32>
    %c0_i32_26 = arith.constant 0 : i32
    %107 = arith.sitofp %c0_i32_26 : i32 to f32
    %108 = vector.shape_cast %32 : vector<1x256xi1> to vector<1x256xi1>
    %109 = vector.broadcast %108 : vector<1x256xi1> to vector<8x256xi1>
    %110 = vector.broadcast %107 : f32 to vector<8x256xf32>
    %111 = arith.select %109, %106, %110 : vector<8x256xi1>, vector<8x256xf32>
    %112 = vector.extract_strided_slice %41 {offsets = [0, 51], sizes = [8, 256], strides = [1, 1]} : vector<8x308xf32> to vector<8x256xf32>
    %c0_i32_27 = arith.constant 0 : i32
    %113 = arith.sitofp %c0_i32_27 : i32 to f32
    %114 = vector.shape_cast %39 : vector<1x256xi1> to vector<1x256xi1>
    %115 = vector.broadcast %114 : vector<1x256xi1> to vector<8x256xi1>
    %116 = vector.broadcast %113 : f32 to vector<8x256xf32>
    %117 = arith.select %115, %112, %116 : vector<8x256xi1>, vector<8x256xf32>
    %118 = tpu.concatenate %47, %48, %54, %60, %66, %67, %73, %79, %85, %86, %92, %98, %104, %105, %111, %117 in 0 : vector<8x256xf32>, vector<8x256xf32>, vector<8x256xf32>, vector<8x256xf32>, vector<8x256xf32>, vector<8x256xf32>, vector<8x256xf32>, vector<8x256xf32>, vector<8x256xf32>, vector<8x256xf32>, vector<8x256xf32>, vector<8x256xf32>, vector<8x256xf32>, vector<8x256xf32>, vector<8x256xf32>, vector<8x256xf32> -> vector<128x256xf32>
    %cst = arith.constant dense<0.000000e+00> : vector<32x256xf32>
    %119 = tpu.matmul %0, %118, %cst {dimension_numbers = #tpu.dot_dimension_numbers<[1], [0], [0], [1], [0, 0, 1, 1], [], []>} : vector<32x128xf32>, vector<128x256xf32>, vector<32x256xf32> -> vector<32x256xf32>
    %120 = vector.broadcast %1 : vector<32x1xf32> to vector<32x256xf32>
    %121 = arith.addf %119, %120 : vector<32x256xf32>
    %c0_28 = arith.constant 0 : index
    %c0_29 = arith.constant 0 : index
    %c0_30 = arith.constant 0 : index
    %122 = vector.load %arg4[%c0_28, %c0_29, %c0_30] : memref<1x32x256xf32, #tpu.memory_space<vmem>>, vector<1x32x256xf32>
    %123 = vector.shape_cast %122 : vector<1x32x256xf32> to vector<32x256xf32>
    %124 = vector.shape_cast %121 : vector<32x256xf32> to vector<1x32x256xf32>
    tpu.vector_store %arg4[%c0_28, %c0_29, %c0_30], %124 {strides = array<i32>} : memref<1x32x256xf32, #tpu.memory_space<vmem>>, vector<1x32x256xf32>,
    return
  }
  func.func @transform_0(%arg0: i32) -> (i32, i32, i32) {
    %c0_i32 = arith.constant 0 : i32
    %c0_i32_0 = arith.constant 0 : i32
    %c0_i32_1 = arith.constant 0 : i32
    return %arg0, %c0_i32, %c0_i32_0 : i32, i32, i32
  }
  func.func @transform_1(%arg0: i32) -> (i32, i32) {
    %c0_i32 = arith.constant 0 : i32
    %c0_i32_0 = arith.constant 0 : i32
    %c0_i32_1 = arith.constant 0 : i32
    return %c0_i32, %c0_i32_0 : i32, i32
  }
  func.func @transform_2(%arg0: i32) -> (i32, i32) {
    %c0_i32 = arith.constant 0 : i32
    %c0_i32_0 = arith.constant 0 : i32
    %c0_i32_1 = arith.constant 0 : i32
    return %c0_i32, %c0_i32_0 : i32, i32
  }
  func.func @transform_3(%arg0: i32) -> (i32, i32, i32) {
    %c0_i32 = arith.constant 0 : i32
    %c0_i32_0 = arith.constant 0 : i32
    %c0_i32_1 = arith.constant 0 : i32
    return %arg0, %c0_i32, %c0_i32_0 : i32, i32, i32
  }
}

</mosaic_0001>

<bundles_post_ra>
// kernel: conv_block_forward.1
= control target key start
LH: loop header
LB: loop body
LE: loop exit
PB: predicated region body
PF: predicated region fallthrough
CT: control target
= control target key end

     0   :  { %s858_s12 = smov 0   ;;  %s1016_s0 = inlined_call_operand.vmem [shape: f32[2,8,308], index: 0, kind: input, shape index: {}]   ;;  %s1017_s1 = inlined_call_operand.vmem [shape: f32[32,128], index: 1, kind: input, shape index: {}]   ;;  %s1018_s2 = inlined_call_operand.vmem [shape: f32[32,1], index: 2, kind: input, shape index: {}]   ;;  %s1019_s3 = inlined_call_operand.vmem [shape: f32[2,32,256], index: 3, kind: output, shape index: {}]  }
   0x1 LB: > { %s609_s13 = sadd.s32 4294967295, %s818_s12   ;;  %p613_p0 = scmp.ge.s32.totalorder %s818_s12, 1  ;;  %s818_s12 = sphi %s858_s12, %s13_s12  }
   0x2   : > { %p137_p1 = scmp.lt.s32.totalorder %s818_s12, 3 }
   0x4   : > { %p138_p2 = pnand %p613_p0, %p137_p1 }
   0x5   : > { %p161_p3 = scmp.lt.s32.totalorder (!%p138_p2), %s609_s13, 1  ;;  %s820_s18 = smov (!%p138_p2), 126   ;;  %v833_v4 = vmov (!%p138_p2), 0.0   ;;  %v836_v5 = vmov (!%p138_p2), 0   ;;  %v176_v6 = vld [vmem:[%s1018_s2 + $0x8] sm:$0xff] (!%p138_p2)  ;;  %v175_v7 = vld [vmem:[%s1018_s2] sm:$0xff] (!%p138_p2)  ;;  %v179_v10 = vlaneseq (!%p138_p2) }
   0x6   : > { %141 = sbr.rel (%p138_p2) target bundleno = 417 (0x1a1), region = 32  ;;  %s821_s19 = smov (!%p138_p2), 127   ;;  %521 = vmatprep.mubr.f32.mxu0 (!%p138_p2), %v833_v4  ;;  %533 = vmatprep.mubr.f32.mxu1 (!%p138_p2), %v833_v4  ;;  %v177_v8 = vld [vmem:[%s1018_s2 + $0x10] sm:$0xff] (!%p138_p2)  ;;  %v178_v9 = vld [vmem:[%s1018_s2 + $0x18] sm:$0xff] (!%p138_p2)  ;;  %vm399_vm0 = vcmask (!%p138_p2), 1039360   ;;  %vm837_vm3 = vmmov (!%p138_p2), 1  }
   0x7   : > { %s822_s20 = smov (!%p138_p2), 125   ;;  %s823_s21 = smov (!%p138_p2), 111   ;;  %811 = vset.pattern.permute.xlu1 (!%p138_p2), %v836_v5  ;;  %810 = vset.pattern.permute.xlu0 (!%p138_p2), %v836_v5  ;;  %v180_v11 = vand.u32 (!%p138_p2), 127, %v179_v10  ;;  %vm252_vm5 = vcmask (!%p138_p2), 1031168   ;;  %vm269_vm6 = vcmask (!%p138_p2), 1022976   ;;  %vm410_vm14 = vcmask (!%p138_p2), 908288  }
   0x8   : > { %s824_s22 = smov (!%p138_p2), 112   ;;  %s825_s23 = smov (!%p138_p2), 109   ;;  %vm282_vm15 = vcmask (!%p138_p2), 916480   ;;  %v171_v35 = vld [vmem:[%s1017_s1] sm:$0xff] (!%p138_p2)  ;;  %v172_v39 = vld [vmem:[%s1017_s1 + $0x8] sm:$0xff] (!%p138_p2)  ;;  %v174_v45 = vld [vmem:[%s1017_s1 + $0x18] sm:$0xff] (!%p138_p2) }
   0x9   : > { %s826_s24 = smov (!%p138_p2), 110   ;;  %s827_s25 = smov (!%p138_p2), 95   ;;  %v181_v12 = vadd.s32 (!%p138_p2), 128, %v180_v11  ;;  %v186_v14 = vand.u32 (!%p138_p2), 15, %v180_v11 }
   0xa   : > { %s828_s26 = smov (!%p138_p2), 96   ;;  %s829_s27 = smov (!%p138_p2), 93  }
   0xb   : > { %s830_s28 = smov (!%p138_p2), 94   ;;  %s831_s29 = smov (!%p138_p2), 79   ;;  %v193_v13 = vand.u32 (!%p138_p2), 15, %v181_v12  ;;  %v206_v16 = vadd.s32 (!%p138_p2), 4294967295, %v186_v14  ;;  %v214_v23 = vadd.s32 (!%p138_p2), 1, %v186_v14  ;;  %v222_v24 = vadd.s32 (!%p138_p2), 2, %v186_v14 }
   0xc   : > { %s832_s30 = smov (!%p138_p2), 80   ;;  %s834_s4 = smov (!%p138_p2), 77  }
   0xd   : > { %s1029_s13 = smov (!%p161_p3, %s609_s13), 1  ;;  %s835_s5 = smov 78   ;;  %v207_v15 = vadd.s32 4294967295, %v193_v13  ;;  %v215_v19 = vadd.s32 1, %v193_v13  ;;  %v223_v20 = vadd.s32 2, %v193_v13  ;;  %vm208_vm2 = vcmp.ge.s32.totalorder %v206_v16, 0 }
   0xe   : > { %s708_s14 = smul.u32 24, %s1029_s13  ;;  %vm914_vm9 = vmpackc.low %vm837_vm3, %vm208_vm2  ;;  %vm218_vm10 = vcmp.lt.s32.totalorder %v214_v23, 16  ;;  %vm226_vm11 = vcmp.lt.s32.totalorder %v222_v24, 16  ;;  %vm421_vm2 = vcmask 777216  }
   0xf   : > { %vm209_vm1 = vcmp.ge.s32.totalorder %v207_v15, 0  ;;  %vm219_vm7 = vcmp.lt.s32.totalorder %v215_v19, 16  ;;  %vm227_vm8 = vcmp.lt.s32.totalorder %v223_v20, 16  ;;  %vm935_vm13 = vmpackc.low %vm226_vm11, %vm218_vm10  ;;  %vm386_vm10 = vcmask 629760  }
  0x10   : > { %s165_s17 = scalar_lea.vmem %s1016_s0, %s708_s14  ;;  %vm907_vm4 = vmpackc.low %vm837_vm3, %vm209_vm1  ;;  %vm295_vm1 = vcmask 900096   ;;  %vm321_vm3 = vcmask 785408   ;;  %vm373_vm11 = vcmask 637952  }
  0x11   : > { %v872_v0 = vld [vmem:[%s165_s17 + $0x8] sm:$0xff]  ;;  %v232_v1 = vld [vmem:[%s165_s17 + $0x10] sm:$0xff]  ;;  %v875_v3 = vld [vmem:[%s165_s17] sm:$0xff] }
  0x12   : > { %v740_v2 = vpack.i.bf16 %v232_v1, %v872_v0  ;;  %vm925_vm12 = vmpackc.low %vm227_vm8, %vm219_vm7  ;;  %vm432_vm7 = vcmask 646144   ;;  %vm360_vm8 = vcmask 654336  }
  0x14   : > { %741 = vrot.lane.b32.xlu1 %v740_v2, %s820_s18  ;;  %736 = vrot.lane.b32.xlu0 %v740_v2, %s821_s19 }
  0x18   : > { %746 = vrot.lane.b32.xlu1 %v740_v2, %s822_s20  ;;  %393 = vrot.lane.b32.xlu0 %v875_v3, %s821_s19 }
  0x1c   : > { %263 = vrot.lane.b32.xlu1 %v875_v3, %s822_s20  ;;  %246 = vrot.lane.b32.xlu0 %v875_v3, %s820_s18 }
  0x20   : > { %756 = vrot.lane.b32.xlu1 %v740_v2, %s823_s21  ;;  %751 = vrot.lane.b32.xlu0 %v740_v2, %s824_s22 }
  0x24   : > { %404 = vrot.lane.b32.xlu1 %v875_v3, %s823_s21  ;;  %276 = vrot.lane.b32.xlu0 %v875_v3, %s824_s22 }
  0x28   : > { %766 = vrot.lane.b32.xlu1 %v740_v2, %s825_s23  ;;  %761 = vrot.lane.b32.xlu0 %v740_v2, %s826_s24 }
  0x2c   : > { %302 = vrot.lane.b32.xlu1 %v875_v3, %s825_s23  ;;  %289 = vrot.lane.b32.xlu0 %v875_v3, %s826_s24  ;;  %s643_s24 = sshll.u32 %s1029_s13, 6 }
  0x30   : > { %776 = vrot.lane.b32.xlu1 %v740_v2, %s827_s25  ;;  %771 = vrot.lane.b32.xlu0 %v740_v2, %s828_s26 }
  0x34   : > { %415 = vrot.lane.b32.xlu1 %v875_v3, %s827_s25  ;;  %315 = vrot.lane.b32.xlu0 %v875_v3, %s828_s26 }
  0x38   : > { %786 = vrot.lane.b32.xlu1 %v740_v2, %s829_s27  ;;  %781 = vrot.lane.b32.xlu0 %v740_v2, %s830_s28 }
  0x3c   : > { %341 = vrot.lane.b32.xlu1 %v875_v3, %s829_s27  ;;  %328 = vrot.lane.b32.xlu0 %v875_v3, %s830_s28  ;;  %s170_s27 = scalar_lea.vmem %s1019_s3, %s643_s24 }
  0x40   : > { %796 = vrot.lane.b32.xlu1 %v740_v2, %s831_s29  ;;  %791 = vrot.lane.b32.xlu0 %v740_v2, %s832_s30 }
  0x44   : > { %426 = vrot.lane.b32.xlu1 %v875_v3, %s831_s29  ;;  %354 = vrot.lane.b32.xlu0 %v875_v3, %s832_s30 }
  0x48   : > { %806 = vrot.lane.b32.xlu1 %v740_v2, %s834_s4  ;;  %801 = vrot.lane.b32.xlu0 %v740_v2, %s835_s5 }
  0x4c   : > { %380 = vrot.lane.b32.xlu1 %v875_v3, %s834_s4  ;;  %367 = vrot.lane.b32.xlu0 %v875_v3, %s835_s5 }
  0x50   : > { %444 = vperm.xlu1 %811, %v176_v6   ;;  %439 = vperm.xlu0 %810, %v175_v7  }
  0x54   : > { %449 = vperm.xlu1 %811, %v177_v8   ;;  %454 = vperm.xlu0 %810, %v178_v9  }
  0x86   : > { %v742_v17 = vpop.permute.xlu1 %741  ;;  %v737_v18 = vpop.permute.xlu0 %736 }
  0x87   : > { %v739_v21 = vunpack.i.h.bf16 %v737_v18  ;;  %v738_v22 = vunpack.i.l.bf16 %v737_v18  ;;  %v744_v25 = vunpack.i.h.bf16 %v742_v17  ;;  %v743_v26 = vunpack.i.l.bf16 %v742_v17 }
  0x89   : > { %v401_v27 = vsel %vm399_vm0, %v738_v22, %v739_v21  ;;  %v254_v38 = vsel %vm252_vm5, %v743_v26, %v744_v25 }
  0x8a   : > { %v747_v29 = vpop.permute.xlu1 %746  ;;  %v394_v30 = vpop.permute.xlu0 %393  ;;  %v644_v31 = vpack.c.bf16 %v401_v27, %v872_v0 }
  0x8b   : > { %v749_v32 = vunpack.i.h.bf16 %v747_v29  ;;  %v748_v33 = vunpack.i.l.bf16 %v747_v29  ;;  %v400_v34 = vsel %vm399_vm0, %v394_v30, %v738_v22  ;;  %vm308_vm0 = vcmask 891904  }
  0x8c   : > { %v647_v36 = vpack.c.bf16 %v400_v34, %v875_v3  ;;  %646 = vmatprep.subr.msk.bf16.mxu0 %vm907_vm4, %v644_v31  ;;  %692 = vmatprep.subr.msk.bf16.mxu1 %vm907_vm4, %v644_v31 }
  0x8d   : > { %v271_v37 = vsel %vm269_vm6, %v748_v33, %v749_v32 }
  0x8e   : > { %v264_v40 = vpop.permute.xlu1 %263  ;;  %649 = vmatpush1.bf16.msk.msra.mxu0 %vm914_vm9, %v647_v36  ;;  %700 = vmatpush1.bf16.msk.msra.mxu1 %vm914_vm9, %v647_v36  ;;  %v650_v41 = vpack.c.bf16 %v271_v37, %v254_v38  ;;  %v247_v42 = vpop.permute.xlu0 %246 }
  0x8f   : > { %v270_v43 = vsel %vm269_vm6, %v264_v40, %v748_v33  ;;  %v253_v44 = vsel %vm252_vm5, %v247_v42, %v743_v26  ;;  %vm347_vm5 = vcmask 760832   ;;  %vm334_vm6 = vcmask 769024  }
  0x90   : > { %v653_v46 = vpack.c.bf16 %v270_v43, %v253_v44  ;;  %652 = vmatprep.subr.msk.bf16.mxu0 %vm925_vm12, %v650_v41  ;;  %693 = vmatprep.subr.msk.bf16.mxu1 %vm925_vm12, %v650_v41 }
  0x92   : > { %v757_v47 = vpop.permute.xlu1 %756  ;;  %655 = vmatpush1.bf16.msk.msra.mxu0 %vm935_vm13, %v653_v46  ;;  %701 = vmatpush1.bf16.msk.msra.mxu1 %vm935_vm13, %v653_v46  ;;  %v752_v48 = vpop.permute.xlu0 %751 }
  0x93   : > { %v759_v49 = vunpack.i.h.bf16 %v757_v47  ;;  %v758_v50 = vunpack.i.l.bf16 %v757_v47  ;;  %v754_v51 = vunpack.i.h.bf16 %v752_v48  ;;  %v753_v52 = vunpack.i.l.bf16 %v752_v48 }
  0x95   : > { %v412_v53 = vsel %vm410_vm14, %v758_v50, %v759_v49  ;;  %v284_v54 = vsel %vm282_vm15, %v753_v52, %v754_v51 }
  0x96   : > { %v405_v55 = vpop.permute.xlu1 %404  ;;  %v277_v56 = vpop.permute.xlu0 %276  ;;  %v656_v57 = vpack.c.bf16 %v412_v53, %v284_v54 }
  0x97   : > { %v411_v58 = vsel %vm410_vm14, %v405_v55, %v758_v50  ;;  %v283_v59 = vsel %vm282_vm15, %v277_v56, %v753_v52 }
  0x98   : > { %v659_v60 = vpack.c.bf16 %v411_v58, %v283_v59  ;;  %658 = vmatprep.subr.msk.bf16.mxu0 %vm907_vm4, %v656_v57  ;;  %694 = vmatprep.subr.msk.bf16.mxu1 %vm907_vm4, %v656_v57 }
  0x9a   : > { %v767_v61 = vpop.permute.xlu1 %766  ;;  %v762_v62 = vpop.permute.xlu0 %761  ;;  %661 = vmatpush1.bf16.msk.msra.mxu0 %vm914_vm9, %v659_v60  ;;  %702 = vmatpush1.bf16.msk.msra.mxu1 %vm914_vm9, %v659_v60 }
  0x9b   : > { %v769_v63 = vunpack.i.h.bf16 %v767_v61  ;;  %v768_v0 = vunpack.i.l.bf16 %v767_v61  ;;  %v764_v1 = vunpack.i.h.bf16 %v762_v62  ;;  %v763_v2 = vunpack.i.l.bf16 %v762_v62 }
  0x9d   : > { %v310_v3 = vsel %vm308_vm0, %v768_v0, %v769_v63  ;;  %v297_v5 = vsel %vm295_vm1, %v763_v2, %v764_v1 }
  0x9e   : > { %v303_v6 = vpop.permute.xlu1 %302  ;;  %v290_v7 = vpop.permute.xlu0 %289  ;;  %v662_v8 = vpack.c.bf16 %v310_v3, %v297_v5 }
  0x9f   : > { %v309_v9 = vsel %vm308_vm0, %v303_v6, %v768_v0  ;;  %v296_v10 = vsel %vm295_vm1, %v290_v7, %v763_v2 }
  0xa0   : > { %v665_v11 = vpack.c.bf16 %v309_v9, %v296_v10  ;;  %664 = vmatprep.subr.msk.bf16.mxu0 %vm925_vm12, %v662_v8  ;;  %695 = vmatprep.subr.msk.bf16.mxu1 %vm925_vm12, %v662_v8  ;;  %v173_v8 = vld [vmem:[%s1017_s1 + $0x10] sm:$0xff] }
  0xa2   : > { %v777_v12 = vpop.permute.xlu1 %776  ;;  %v772_v13 = vpop.permute.xlu0 %771  ;;  %667 = vmatpush1.bf16.msk.msra.mxu0 %vm935_vm13, %v665_v11  ;;  %703 = vmatpush1.bf16.msk.msra.mxu1 %vm935_vm13, %v665_v11 }
  0xa3   : > { %v779_v14 = vunpack.i.h.bf16 %v777_v12  ;;  %v778_v15 = vunpack.i.l.bf16 %v777_v12  ;;  %v774_v16 = vunpack.i.h.bf16 %v772_v13  ;;  %v773_v17 = vunpack.i.l.bf16 %v772_v13 }
  0xa5   : > { %v423_v18 = vsel %vm421_vm2, %v778_v15, %v779_v14  ;;  %v323_v19 = vsel %vm321_vm3, %v773_v17, %v774_v16 }
  0xa6   : > { %v416_v20 = vpop.permute.xlu1 %415  ;;  %v316_v21 = vpop.permute.xlu0 %315  ;;  %v668_v22 = vpack.c.bf16 %v423_v18, %v323_v19 }
  0xa7   : > { %v422_v23 = vsel %vm421_vm2, %v416_v20, %v778_v15  ;;  %v322_v24 = vsel %vm321_vm3, %v316_v21, %v773_v17 }
  0xa8   : > { %v671_v25 = vpack.c.bf16 %v422_v23, %v322_v24  ;;  %670 = vmatprep.subr.msk.bf16.mxu0 %vm907_vm4, %v668_v22  ;;  %696 = vmatprep.subr.msk.bf16.mxu1 %vm907_vm4, %v668_v22 }
  0xaa   : > { %v787_v26 = vpop.permute.xlu1 %786  ;;  %v782_v27 = vpop.permute.xlu0 %781  ;;  %673 = vmatpush1.bf16.msk.msra.mxu0 %vm914_vm9, %v671_v25  ;;  %704 = vmatpush1.bf16.msk.msra.mxu1 %vm914_vm9, %v671_v25 }
  0xab   : > { %v789_v29 = vunpack.i.h.bf16 %v787_v26  ;;  %v788_v30 = vunpack.i.l.bf16 %v787_v26  ;;  %v784_v31 = vunpack.i.h.bf16 %v782_v27  ;;  %v783_v32 = vunpack.i.l.bf16 %v782_v27 }
  0xad   : > { %v349_v33 = vsel %vm347_vm5, %v788_v30, %v789_v29  ;;  %v336_v34 = vsel %vm334_vm6, %v783_v32, %v784_v31 }
  0xae   : > { %v342_v36 = vpop.permute.xlu1 %341  ;;  %v329_v37 = vpop.permute.xlu0 %328  ;;  %v674_v38 = vpack.c.bf16 %v349_v33, %v336_v34 }
  0xaf   : > { %v348_v40 = vsel %vm347_vm5, %v342_v36, %v788_v30  ;;  %v335_v41 = vsel %vm334_vm6, %v329_v37, %v783_v32 }
  0xb0   : > { %v677_v42 = vpack.c.bf16 %v348_v40, %v335_v41  ;;  %676 = vmatprep.subr.msk.bf16.mxu0 %vm925_vm12, %v674_v38  ;;  %697 = vmatprep.subr.msk.bf16.mxu1 %vm925_vm12, %v674_v38 }
  0xb2   : > { %v797_v43 = vpop.permute.xlu1 %796  ;;  %v792_v44 = vpop.permute.xlu0 %791  ;;  %679 = vmatpush1.bf16.msk.msra.mxu0 %vm935_vm13, %v677_v42  ;;  %705 = vmatpush1.bf16.msk.msra.mxu1 %vm935_vm13, %v677_v42 }
  0xb3   : > { %v799_v46 = vunpack.i.h.bf16 %v797_v43  ;;  %v798_v47 = vunpack.i.l.bf16 %v797_v43  ;;  %v794_v48 = vunpack.i.h.bf16 %v792_v44  ;;  %v793_v49 = vunpack.i.l.bf16 %v792_v44 }
  0xb5   : > { %v434_v50 = vsel %vm432_vm7, %v798_v47, %v799_v46  ;;  %v362_v51 = vsel %vm360_vm8, %v793_v49, %v794_v48 }
  0xb6   : > { %v427_v52 = vpop.permute.xlu1 %426  ;;  %v355_v53 = vpop.permute.xlu0 %354  ;;  %v680_v54 = vpack.c.bf16 %v434_v50, %v362_v51 }
  0xb7   : > { %v433_v55 = vsel %vm432_vm7, %v427_v52, %v798_v47  ;;  %v361_v56 = vsel %vm360_vm8, %v355_v53, %v793_v49 }
  0xb8   : > { %v683_v57 = vpack.c.bf16 %v433_v55, %v361_v56  ;;  %682 = vmatprep.subr.msk.bf16.mxu0 %vm907_vm4, %v680_v54  ;;  %698 = vmatprep.subr.msk.bf16.mxu1 %vm907_vm4, %v680_v54 }
  0xba   : > { %v807_v58 = vpop.permute.xlu1 %806  ;;  %v802_v59 = vpop.permute.xlu0 %801  ;;  %685 = vmatpush1.bf16.msk.msra.mxu0 %vm914_vm9, %v683_v57  ;;  %706 = vmatpush1.bf16.msk.msra.mxu1 %vm914_vm9, %v683_v57 }
  0xbb   : > { %v809_v60 = vunpack.i.h.bf16 %v807_v58  ;;  %v808_v61 = vunpack.i.l.bf16 %v807_v58  ;;  %v804_v62 = vunpack.i.h.bf16 %v802_v59  ;;  %v803_v63 = vunpack.i.l.bf16 %v802_v59 }
  0xbd   : > { %v388_v0 = vsel %vm386_vm10, %v808_v61, %v809_v60  ;;  %v375_v1 = vsel %vm373_vm11, %v803_v63, %v804_v62 }
  0xbe   : > { %v381_v2 = vpop.permute.xlu1 %380  ;;  %v368_v3 = vpop.permute.xlu0 %367  ;;  %v686_v28 = vpack.c.bf16 %v388_v0, %v375_v1 }
  0xbf   : > { %v387_v5 = vsel %vm386_vm10, %v381_v2, %v808_v61  ;;  %v374_v6 = vsel %vm373_vm11, %v368_v3, %v803_v63 }
  0xc0   : > { %v689_v7 = vpack.c.bf16 %v387_v5, %v374_v6  ;;  %688 = vmatprep.subr.msk.bf16.mxu0 %vm925_vm12, %v686_v28  ;;  %699 = vmatprep.subr.msk.bf16.mxu1 %vm925_vm12, %v686_v28 }
  0xc2   : > { %691 = vmatpush1.bf16.msk.msra.mxu0 %vm935_vm13, %v689_v7  ;;  %707 = vmatpush1.bf16.msk.msra.mxu1 %vm935_vm13, %v689_v7 }
  0xc5   : > { %522 = vmatmul.mubr.f32.vlgmr.msra.gmra.mrb[0].mxu0 %v171_v35  ;;  %534 = vmatmul.mubr.f32.vlgmr.msra.gmra.mrb[0].mxu1 %v173_v8 }
  0xc6   : > { %527 = vmatprep.mubr.f32.mxu0 %v833_v4  ;;  %539 = vmatprep.mubr.f32.mxu1 %v833_v4 }
  0xc9   : > { %528 = vmatmul.mubr.f32.gmra.mrb[2].mxu0 %v172_v39  ;;  %540 = vmatmul.mubr.f32.gmra.mrb[2].mxu1 %v174_v45 }
  0xcf   : > { %v445_v9 = vpop.permute.xlu1 %444  ;;  %v440_v10 = vpop.permute.xlu0 %439 }
  0xd3   : > { %v450_v11 = vpop.permute.xlu1 %449  ;;  %v455_v19 = vpop.permute.xlu0 %454 }
 0x198   : > { %v523_v12 = vpop.f32.mrb[0].mxu0  ;;  %v535_v4 = vpop.f32.mrb[0].mxu1 }
 0x199   : > { %v524_v13 = vadd.f32 %v523_v12, %v440_v10  ;;  %v536_v14 = vadd.f32 %v535_v4, %v450_v11  ;;  %v525_v15 = vpop.f32.mrb[1].mxu0  ;;  %v537_v16 = vpop.f32.mrb[1].mxu1 }
 0x19a   : > { %v526_v17 = vadd.f32 %v525_v15, %v440_v10  ;;  %v538_v18 = vadd.f32 %v537_v16, %v450_v11 }
 0x19b   : > { %546 = vst [vmem:[%s170_s27] sm:$0xff] %v524_v13  ;;  %550 = vst [vmem:[%s170_s27 + $0x20] sm:$0xff] %v536_v14 }
 0x19c   : > { %547 = vst [vmem:[%s170_s27 + $0x8] sm:$0xff] %v526_v17  ;;  %551 = vst [vmem:[%s170_s27 + $0x28] sm:$0xff] %v538_v18  ;;  %v529_v20 = vpop.f32.mrb[2].mxu0  ;;  %v541_v21 = vpop.f32.mrb[2].mxu1 }
 0x19d   : > { %v530_v22 = vadd.f32 %v529_v20, %v445_v9  ;;  %v542_v23 = vadd.f32 %v541_v21, %v455_v19  ;;  %v531_v24 = vpop.f32.mrb[3].mxu0  ;;  %v543_v25 = vpop.f32.mrb[3].mxu1 }
 0x19e   : > { %v532_v26 = vadd.f32 %v531_v24, %v445_v9  ;;  %v544_v27 = vadd.f32 %v543_v25, %v455_v19 }
 0x19f   : > { %548 = vst [vmem:[%s170_s27 + $0x10] sm:$0xff] %v530_v22  ;;  %552 = vst [vmem:[%s170_s27 + $0x30] sm:$0xff] %v542_v23 }
 0x1a0   : > { %549 = vst [vmem:[%s170_s27 + $0x18] sm:$0xff] %v532_v26  ;;  %553 = vst [vmem:[%s170_s27 + $0x38] sm:$0xff] %v544_v27 }
 0x1a1 PF: > { %s13_s12 = sadd.s32 1, %s818_s12  }
 0x1a2   : > { %p10_p4 = scmp.ge.s32.totalorder %s13_s12, 4  }
 0x1a4   :  { %12 = sbr.rel (!%p10_p4) target bundleno = 1 (0x1), region = 62 }

</bundles_post_ra>
